<compile_context>
chip_gen: v7x
topology: tpu7x:2x2x1
jax: 0.10.0
libtpu: 0.0.40
codegen_flags: <defaults>
</compile_context>

<pallas_src>
import functools

import jax
import jax.numpy as jnp
from jax import lax
from jax.experimental import pallas as pl
from jax.experimental.pallas import tpu as pltpu

_LANE = 128


def _mlp_softmax(pooled, w1_ref, w2_ref, height, C):
    """pooled (C,1) f32 channel means -> list of `height` (C,1) softmax weights.

    w1_ref: (d, C), w2_ref: (height*C, d).  Single MXU matvec for the second
    1x1 conv (rows h*C+c match PyTorch's Conv2d(d, C*height) channel order).
    """
    hidden = jnp.dot(w1_ref[...], pooled, preferred_element_type=jnp.float32)  # (d, 1)
    hidden = jnp.maximum(hidden, 0.0)
    logits = jnp.dot(w2_ref[...], hidden,
                     preferred_element_type=jnp.float32)                       # (height*C, 1)
    per_h = [logits[h * C:(h + 1) * C] for h in range(height)]                 # (C, 1) each
    m = per_h[0]
    for h in range(1, height):
        m = jnp.maximum(m, per_h[h])
    exps = [jnp.exp(p - m) for p in per_h]
    den = exps[0]
    for h in range(1, height):
        den = den + exps[h]
    inv = 1.0 / den                 # single tiny exact divide, once per batch
    return [e * inv for e in exps]


# ----------------------------------------------------------------------------
# Fused single-pass path: grid=(B,), every height slab is read from HBM once.
# ----------------------------------------------------------------------------
def _fused_kernel(*refs, height, C, inv_hw):
    # refs: x_0..x_{height-1} (1, C, HW), w1 (d, C), w2 (height*C, d), out (1, C, HW)
    x_refs = refs[:height]
    w1_ref = refs[height]
    w2_ref = refs[height + 1]
    o_ref = refs[height + 2]

    # Sum heights first (pure VPU adds), then a single cross-lane reduction.
    ssum = x_refs[0][0].astype(jnp.float32)
    for h in range(1, height):
        ssum = ssum + x_refs[h][0].astype(jnp.float32)
    pooled = jnp.sum(ssum, axis=-1, keepdims=True) * inv_hw                    # (C, 1)

    attn = _mlp_softmax(pooled, w1_ref, w2_ref, height, C)

    # Weighted recombination straight from the VMEM-resident slabs.
    acc = x_refs[0][0].astype(jnp.float32) * attn[0]
    for h in range(1, height):
        acc = acc + x_refs[h][0].astype(jnp.float32) * attn[h]
    o_ref[0] = acc.astype(o_ref.dtype)


# ----------------------------------------------------------------------------
# Two-pass path, pass 1: per-tile partial channel sums (fully parallel grid).
# ----------------------------------------------------------------------------
def _pool_tiles_kernel(*refs, height, tile, hw):
    # refs: x_0..x_{height-1} (1, C, tile), partial out (1, 1, C, 1)
    x_refs = refs[:height]
    part_ref = refs[height]

    ssum = x_refs[0][0].astype(jnp.float32)
    for h in range(1, height):
        ssum = ssum + x_refs[h][0].astype(jnp.float32)

    if hw % tile != 0:
        # Ragged tail tile: OOB lane values are unspecified -> select zero
        # (jnp.where, not a multiply, so NaN garbage cannot propagate).
        t = pl.program_id(1)
        lane_idx = t * tile + lax.broadcasted_iota(jnp.int32, ssum.shape, 1)
        ssum = jnp.where(lane_idx < hw, ssum, 0.0)

    # One cross-lane reduce per tile (heights already summed above).
    part_ref[0, 0] = jnp.sum(ssum, axis=-1, keepdims=True)                     # (C, 1)


# ----------------------------------------------------------------------------
# Two-pass path, pass 1.5: per-batch reduce of partials + MLP + softmax (tiny).
# ----------------------------------------------------------------------------
def _attn_kernel(part_ref, w1_ref, w2_ref, attn_ref, *, height, C, inv_hw):
    # part_ref (1, n_t, C, 1), attn_ref (1, height, C, 1)
    pooled = jnp.sum(part_ref[0], axis=0) * inv_hw                             # (C, 1)
    attn = _mlp_softmax(pooled, w1_ref, w2_ref, height, C)
    for h in range(height):
        attn_ref[0, h] = attn[h]


# ----------------------------------------------------------------------------
# Two-pass path, pass 2: weighted recombination (both grid axes parallel).
# ----------------------------------------------------------------------------
def _combine_kernel(*refs, height):
    # refs: attn (1, height, C, 1), x_0..x_{height-1} (1, C, tile), out (1, C, tile)
    attn_ref = refs[0]
    x_refs = refs[1:1 + height]
    o_ref = refs[1 + height]

    acc = x_refs[0][0].astype(jnp.float32) * attn_ref[0, 0]
    for h in range(1, height):
        acc = acc + x_refs[h][0].astype(jnp.float32) * attn_ref[0, h]
    # OOB lanes of the last (ragged) block are discarded by Pallas on writeback.
    o_ref[0] = acc.astype(o_ref.dtype)


def _vmem_budget():
    """Scoped-VMEM limit derived from the physical VMEM of this generation."""
    try:
        info = pltpu.get_tpu_info()
        cap = int(getattr(info, "vmem_capacity_bytes", 64 << 20))
    except Exception:
        cap = 64 << 20                      # conservative (v7x-sized) fallback
    cap = max(cap, 32 << 20)
    # ~48 MiB on v7x (64 MiB physical), ~96 MiB on v5e/v6e (128 MiB physical).
    return max(16 << 20, min((cap * 3) // 4, 100 << 20))


def sk_fusion(in_feats, w1, w2, *, height=2, max_tile=None, force_two_pass=False):
    """Pallas SKFusion. in_feats: list of `height` NCHW arrays (B, C, H, W).

    w1: (d, C)          == mlp[0].weight (Conv2d C->d, 1x1, no bias) squeezed
    w2: (height, C, d)  == mlp[2].weight (Conv2d d->C*height) viewed (height, C, d)
    max_tile / force_two_pass are testing knobs (default: auto from VMEM).
    """
    assert len(in_feats) == height
    B, C, H, W = in_feats[0].shape
    HW = H * W
    d = w1.shape[0]
    dtype = in_feats[0].dtype
    elem = jnp.dtype(dtype).itemsize

    # (B,C,H,W) -> (B,C,HW) is contiguous (free); no jnp.pad, no jnp.stack.
    xs = [f.reshape(B, C, HW) for f in in_feats]
    w2_flat = w2.reshape(height * C, d)

    vmem_limit = _vmem_budget()
    inv_hw = 1.0 / HW

    # ---------------- fused single-pass path ---------------------------------
    # Double-buffered (height+1) full slabs + two f32 temps + weights.
    fused_bytes = (2 * (height + 1) * C * HW * elem + 2 * C * HW * 4
                   + (d * C + height * C * d) * 4)
    if (not force_two_pass) and fused_bytes <= (vmem_limit * 9) // 10:
        x_spec = pl.BlockSpec((1, C, HW), lambda b: (b, 0, 0))
        out = pl.pallas_call(
            functools.partial(_fused_kernel, height=height, C=C, inv_hw=inv_hw),
            out_shape=jax.ShapeDtypeStruct((B, C, HW), dtype),
            grid_spec=pltpu.PrefetchScalarGridSpec(
                num_scalar_prefetch=0,
                grid=(B,),
                in_specs=[x_spec] * height + [
                    pl.BlockSpec((d, C), lambda b: (0, 0)),
                    pl.BlockSpec((height * C, d), lambda b: (0, 0)),
                ],
                out_specs=x_spec,
            ),
            compiler_params=pltpu.CompilerParams(
                dimension_semantics=("parallel",),
                vmem_limit_bytes=vmem_limit),
        )(*xs, w1, w2_flat)
        return out.reshape(B, C, H, W)

    # ---------------- two-pass tiled path -------------------------------------
    if HW <= _LANE:
        tile = HW                         # full-width block: exempt from 128 rule
    else:
        # Pass 2 is the larger VMEM consumer: 2 buffers x (height inputs + 1
        # output) blocks of C*tile*elem plus one f32 accumulator temp.
        bytes_per_lane = C * (2 * (height + 1) * elem + 4)
        tile = int(((vmem_limit * 9) // 10) // bytes_per_lane) // _LANE * _LANE
        cap = 32768                       # plenty to hit the HBM roofline
        if max_tile is not None:
            mt = (int(max_tile) // _LANE) * _LANE
            assert mt >= _LANE, "max_tile must be >= 128"
            cap = min(cap, mt)
        tile = max(_LANE, min(tile, cap))
        tile = min(tile, (HW // _LANE) * _LANE)   # block never exceeds the array
    n_t = pl.cdiv(HW, tile)

    x_spec = pl.BlockSpec((1, C, tile), lambda b, t: (b, 0, t))
    part_spec = pl.BlockSpec((1, 1, C, 1), lambda b, t: (b, t, 0, 0))
    attn_spec2 = pl.BlockSpec((1, height, C, 1), lambda b, t: (b, 0, 0, 0))

    # Pass 1: per-tile partial channel sums; both grid axes parallel so the
    # pooling reduction spreads across both v7x TensorCores even for B=1.
    partial = pl.pallas_call(
        functools.partial(_pool_tiles_kernel, height=height, tile=tile, hw=HW),
        out_shape=jax.ShapeDtypeStruct((B, n_t, C, 1), jnp.float32),
        grid_spec=pltpu.PrefetchScalarGridSpec(
            num_scalar_prefetch=0,
            grid=(B, n_t),
            in_specs=[x_spec] * height,
            out_specs=part_spec,
        ),
        compiler_params=pltpu.CompilerParams(
            dimension_semantics=("parallel", "parallel"),
            vmem_limit_bytes=vmem_limit),
    )(*xs)

    # Pass 1.5: tiny per-batch reduce of partials -> MLP -> softmax (negligible data).
    attn = pl.pallas_call(
        functools.partial(_attn_kernel, height=height, C=C, inv_hw=inv_hw),
        out_shape=jax.ShapeDtypeStruct((B, height, C, 1), jnp.float32),
        grid_spec=pltpu.PrefetchScalarGridSpec(
            num_scalar_prefetch=0,
            grid=(B,),
            in_specs=[
                pl.BlockSpec((1, n_t, C, 1), lambda b: (b, 0, 0, 0)),
                pl.BlockSpec((d, C), lambda b: (0, 0)),
                pl.BlockSpec((height * C, d), lambda b: (0, 0)),
            ],
            out_specs=pl.BlockSpec((1, height, C, 1), lambda b: (b, 0, 0, 0)),
        ),
        compiler_params=pltpu.CompilerParams(
            dimension_semantics=("parallel",),
            vmem_limit_bytes=vmem_limit),
    )(partial, w1, w2_flat)

    # Pass 2: weighted recombination, tiled over HW (unpadded output; OOB lanes
    # of the ragged last block are discarded by Pallas).
    out = pl.pallas_call(
        functools.partial(_combine_kernel, height=height),
        out_shape=jax.ShapeDtypeStruct((B, C, HW), dtype),
        grid_spec=pltpu.PrefetchScalarGridSpec(
            num_scalar_prefetch=0,
            grid=(B, n_t),
            in_specs=[attn_spec2] + [x_spec] * height,
            out_specs=x_spec,
        ),
        compiler_params=pltpu.CompilerParams(
            dimension_semantics=("parallel", "parallel"),
            vmem_limit_bytes=vmem_limit),
    )(attn, *xs)

    return out.reshape(B, C, H, W)


def sk_fusion_ref(in_feats, w1, w2, *, height=2):
    """Pure-JAX reference matching the PyTorch forward."""
    x = jnp.stack(in_feats, axis=1)                  # (B, height, C, H, W)
    feats_sum = jnp.sum(x, axis=1)                   # (B, C, H, W)
    pooled = jnp.mean(feats_sum, axis=(2, 3))        # (B, C)
    hidden = jax.nn.relu(pooled @ w1.T)              # (B, d)
    logits = jnp.einsum("bd,hcd->bhc", hidden, w2)   # (B, height, C)
    attn = jax.nn.softmax(logits, axis=1)
    return jnp.sum(x * attn[:, :, :, None, None], axis=1)


if __name__ == "__main__":
    key = jax.random.PRNGKey(0)
    height, reduction = 2, 8

    def make(B, C, H, W, key):
        d = max(C // reduction, 4)
        k1, k2, k3, k4, key = jax.random.split(key, 5)
        x0 = jax.random.normal(k1, (B, C, H, W), dtype=jnp.float32)
        x1 = jax.random.normal(k2, (B, C, H, W), dtype=jnp.float32)
        w1 = 0.2 * jax.random.normal(k3, (d, C), dtype=jnp.float32)
        w2 = 0.2 * jax.random.normal(k4, (height, C, d), dtype=jnp.float32)
        return [x0, x1], w1, w2, key

    # 1) Fused single-pass path, lane-aligned spatial extent (HW=256).
    feats, w1, w2, key = make(2, 4, 16, 16, key)
    out = jax.block_until_ready(sk_fusion(feats, w1, w2, height=height))
    ref = sk_fusion_ref(feats, w1, w2, height=height)
    assert out.shape == feats[0].shape
    assert jnp.allclose(out, ref, atol=1e-5, rtol=1e-5), "mismatch (fused, aligned)"

    # 2) Fused path with a ragged spatial extent (HW=100, full-dim block).
    feats, w1, w2, key = make(1, 4, 10, 10, key)
    out = jax.block_until_ready(sk_fusion(feats, w1, w2, height=height))
    ref = sk_fusion_ref(feats, w1, w2, height=height)
    assert jnp.allclose(out, ref, atol=1e-5, rtol=1e-5), "mismatch (fused, ragged)"

    # 3) Two-pass tiled path with a ragged tail tile (HW=576, tile=256 -> 3 tiles).
    feats, w1, w2, key = make(2, 8, 24, 24, key)
    out = jax.block_until_ready(
        sk_fusion(feats, w1, w2, height=height, max_tile=256, force_two_pass=True))
    ref = sk_fusion_ref(feats, w1, w2, height=height)
    assert out.shape == feats[0].shape
    assert jnp.allclose(out, ref, atol=1e-5, rtol=1e-5), "mismatch (two-pass, ragged)"

    # 4) Two-pass tiled path with evenly dividing tiles (HW=512, tile=256 -> 2 tiles).
    feats, w1, w2, key = make(2, 8, 16, 32, key)
    out = jax.block_until_ready(
        sk_fusion(feats, w1, w2, height=height, max_tile=256, force_two_pass=True))
    ref = sk_fusion_ref(feats, w1, w2, height=height)
    assert jnp.allclose(out, ref, atol=1e-5, rtol=1e-5), "mismatch (two-pass, aligned)"

    print("KERNEL_OK")
</pallas_src>

<mosaic_0001>
module attributes {stable_mosaic.version = 11 : i64} {
  func.func @_fused_kernel(%arg0: i32, %arg1: memref<1x4x256xf32, #tpu.memory_space<vmem>>, %arg2: memref<1x4x256xf32, #tpu.memory_space<vmem>>, %arg3: memref<4x4xf32, #tpu.memory_space<vmem>>, %arg4: memref<8x4xf32, #tpu.memory_space<vmem>>, %arg5: memref<1x4x256xf32, #tpu.memory_space<vmem>>) attributes {dimension_semantics = [#tpu.dimension_semantics<parallel>], iteration_bounds = array<i64: 2>, scalar_prefetch = 0 : i64, scratch_operands = 0 : i64, tpu.core_type = #tpu.core_type<tc>, window_params = [{transform_indices = @transform_0, window_bounds = array<i64: 1, 4, 256>}, {transform_indices = @transform_1, window_bounds = array<i64: 1, 4, 256>}, {pipeline_mode = #tpu.pipeline_mode<synchronous>, transform_indices = @transform_2, window_bounds = array<i64: 4, 4>}, {pipeline_mode = #tpu.pipeline_mode<synchronous>, transform_indices = @transform_3, window_bounds = array<i64: 8, 4>}, {transform_indices = @transform_4, window_bounds = array<i64: 1, 4, 256>}]} {
    %c0 = arith.constant 0 : index
    %c0_0 = arith.constant 0 : index
    %c0_1 = arith.constant 0 : index
    %0 = vector.load %arg1[%c0, %c0_0, %c0_1] : memref<1x4x256xf32, #tpu.memory_space<vmem>>, vector<1x4x256xf32>
    %1 = vector.shape_cast %0 : vector<1x4x256xf32> to vector<4x256xf32>
    %c0_2 = arith.constant 0 : index
    %c0_3 = arith.constant 0 : index
    %c0_4 = arith.constant 0 : index
    %2 = vector.load %arg2[%c0_2, %c0_3, %c0_4] : memref<1x4x256xf32, #tpu.memory_space<vmem>>, vector<1x4x256xf32>
    %3 = vector.shape_cast %2 : vector<1x4x256xf32> to vector<4x256xf32>
    %4 = arith.addf %1, %3 : vector<4x256xf32>
    %cst = arith.constant dense<0.000000e+00> : vector<4xf32>
    %5 = vector.multi_reduction <add>, %4, %cst [1] : vector<4x256xf32> to vector<4xf32>
    %6 = vector.shape_cast %5 : vector<4xf32> to vector<4x1xf32>
    %cst_5 = arith.constant 3.906250e-03 : f32
    %7 = vector.broadcast %cst_5 : f32 to vector<4x1xf32>
    %8 = arith.mulf %6, %7 : vector<4x1xf32>
    %c0_6 = arith.constant 0 : index
    %c0_7 = arith.constant 0 : index
    %9 = vector.load %arg3[%c0_6, %c0_7] : memref<4x4xf32, #tpu.memory_space<vmem>>, vector<4x4xf32>
    %cst_8 = arith.constant dense<0.000000e+00> : vector<4x1xf32>
    %10 = tpu.matmul %9, %8, %cst_8 {dimension_numbers = #tpu.dot_dimension_numbers<[1], [0], [0], [1], [0, 0, 1, 1], [], []>} : vector<4x4xf32>, vector<4x1xf32>, vector<4x1xf32> -> vector<4x1xf32>
    %cst_9 = arith.constant 0.000000e+00 : f32
    %11 = vector.broadcast %cst_9 : f32 to vector<4x1xf32>
    %12 = arith.maximumf %10, %11 : vector<4x1xf32>
    %c0_10 = arith.constant 0 : index
    %c0_11 = arith.constant 0 : index
    %13 = vector.load %arg4[%c0_10, %c0_11] : memref<8x4xf32, #tpu.memory_space<vmem>>, vector<8x4xf32>
    %cst_12 = arith.constant dense<0.000000e+00> : vector<8x1xf32>
    %14 = tpu.matmul %13, %12, %cst_12 {dimension_numbers = #tpu.dot_dimension_numbers<[1], [0], [0], [1], [0, 0, 1, 1], [], []>} : vector<8x4xf32>, vector<4x1xf32>, vector<8x1xf32> -> vector<8x1xf32>
    %15 = vector.extract_strided_slice %14 {offsets = [0, 0], sizes = [4, 1], strides = [1, 1]} : vector<8x1xf32> to vector<4x1xf32>
    %16 = vector.extract_strided_slice %14 {offsets = [4, 0], sizes = [4, 1], strides = [1, 1]} : vector<8x1xf32> to vector<4x1xf32>
    %17 = arith.maximumf %15, %16 : vector<4x1xf32>
    %18 = arith.subf %15, %17 : vector<4x1xf32>
    %19 = math.exp %18 : vector<4x1xf32>
    %20 = arith.subf %16, %17 : vector<4x1xf32>
    %21 = math.exp %20 : vector<4x1xf32>
    %22 = arith.addf %19, %21 : vector<4x1xf32>
    %cst_13 = arith.constant 1.000000e+00 : f32
    %23 = vector.broadcast %cst_13 : f32 to vector<4x1xf32>
    %24 = arith.divf %23, %22 : vector<4x1xf32>
    %25 = arith.mulf %19, %24 : vector<4x1xf32>
    %26 = arith.mulf %21, %24 : vector<4x1xf32>
    %c0_14 = arith.constant 0 : index
    %c0_15 = arith.constant 0 : index
    %c0_16 = arith.constant 0 : index
    %27 = vector.load %arg1[%c0_14, %c0_15, %c0_16] : memref<1x4x256xf32, #tpu.memory_space<vmem>>, vector<1x4x256xf32>
    %28 = vector.shape_cast %27 : vector<1x4x256xf32> to vector<4x256xf32>
    %29 = vector.broadcast %25 : vector<4x1xf32> to vector<4x256xf32>
    %30 = arith.mulf %28, %29 : vector<4x256xf32>
    %c0_17 = arith.constant 0 : index
    %c0_18 = arith.constant 0 : index
    %c0_19 = arith.constant 0 : index
    %31 = vector.load %arg2[%c0_17, %c0_18, %c0_19] : memref<1x4x256xf32, #tpu.memory_space<vmem>>, vector<1x4x256xf32>
    %32 = vector.shape_cast %31 : vector<1x4x256xf32> to vector<4x256xf32>
    %33 = vector.broadcast %26 : vector<4x1xf32> to vector<4x256xf32>
    %34 = arith.mulf %32, %33 : vector<4x256xf32>
    %35 = arith.addf %30, %34 : vector<4x256xf32>
    %c0_20 = arith.constant 0 : index
    %c0_21 = arith.constant 0 : index
    %c0_22 = arith.constant 0 : index
    %36 = vector.load %arg5[%c0_20, %c0_21, %c0_22] : memref<1x4x256xf32, #tpu.memory_space<vmem>>, vector<1x4x256xf32>
    %37 = vector.shape_cast %36 : vector<1x4x256xf32> to vector<4x256xf32>
    %38 = vector.shape_cast %35 : vector<4x256xf32> to vector<1x4x256xf32>
    tpu.vector_store %arg5[%c0_20, %c0_21, %c0_22], %38 {strides = array<i32>} : memref<1x4x256xf32, #tpu.memory_space<vmem>>, vector<1x4x256xf32>,
    return
  }
  func.func @transform_0(%arg0: i32) -> (i32, i32, i32) {
    %c0_i32 = arith.constant 0 : i32
    %c0_i32_0 = arith.constant 0 : i32
    %c0_i32_1 = arith.constant 0 : i32
    return %arg0, %c0_i32, %c0_i32_0 : i32, i32, i32
  }
  func.func @transform_1(%arg0: i32) -> (i32, i32, i32) {
    %c0_i32 = arith.constant 0 : i32
    %c0_i32_0 = arith.constant 0 : i32
    %c0_i32_1 = arith.constant 0 : i32
    return %arg0, %c0_i32, %c0_i32_0 : i32, i32, i32
  }
  func.func @transform_2(%arg0: i32) -> (i32, i32) {
    %c0_i32 = arith.constant 0 : i32
    %c0_i32_0 = arith.constant 0 : i32
    %c0_i32_1 = arith.constant 0 : i32
    return %c0_i32, %c0_i32_0 : i32, i32
  }
  func.func @transform_3(%arg0: i32) -> (i32, i32) {
    %c0_i32 = arith.constant 0 : i32
    %c0_i32_0 = arith.constant 0 : i32
    %c0_i32_1 = arith.constant 0 : i32
    return %c0_i32, %c0_i32_0 : i32, i32
  }
  func.func @transform_4(%arg0: i32) -> (i32, i32, i32) {
    %c0_i32 = arith.constant 0 : i32
    %c0_i32_0 = arith.constant 0 : i32
    %c0_i32_1 = arith.constant 0 : i32
    return %arg0, %c0_i32, %c0_i32_0 : i32, i32, i32
  }
}

</mosaic_0001>

<bundles_post_ra>
// kernel: tpu_custom_call.1
= control target key start
LH: loop header
LB: loop body
LE: loop exit
PB: predicated region body
PF: predicated region fallthrough
CT: control target
= control target key end

     0   :  { %9 = vsyncpa [#allocation3], 0  ;;  %s1081_s0 = inlined_call_operand.hbm [shape: f32[2,4,256], index: 0, kind: input, shape index: {}]   ;;  %s1082_s1 = inlined_call_operand.hbm [shape: f32[2,4,256], index: 1, kind: input, shape index: {}]   ;;  %s1083_s2 = inlined_call_operand.vmem [shape: f32[4,4], index: 2, kind: input, shape index: {}]   ;;  %s1084_s3 = inlined_call_operand.vmem [shape: f32[8,4], index: 3, kind: input, shape index: {}]   ;;  %s1085_s4 = inlined_call_operand.hbm [shape: f32[2,4,256], index: 4, kind: output, shape index: {}]  }
   0x1   :  { %11 = vsyncpa [#allocation3 + $0x1], 0 }
   0x2   :  { %12 = vsyncpa [#allocation6], 0 }
   0x3   :  { %14 = vsyncpa [#allocation6 + $0x1], 0 }
   0x4   :  { %15 = vsyncpa [#allocation4], 0 }
   0x5   :  { %17 = vsyncpa [#allocation4 + $0x1], 0  ;;  %s849_s15 = smov 0   ;;  %s851_s16 = smov 0  }
   0x6   :  { %s853_s17 = smov 0   ;;  %s855_s18 = smov 0  }
   0x7 LB: > { %s870_s19 = sadd.s32 4294967295, %s814_s18   ;;  %s581_s20 = sadd.s32 4294967294, %s814_s18   ;;  %s814_s18 = sphi %s855_s18, %s1104_s18   ;;  %s810_s17 = sphi %s853_s17, %s1103_s17   ;;  %s806_s16 = sphi %s851_s16, %s1102_s16   ;;  %s802_s15 = sphi %s849_s15, %s1101_s15  }
   0x8   : > { %s874_s21 = sadd.s32 1, %s814_s18   ;;  %s30_s22 = sadd.s32 1, %s810_s17 }
   0x9   : > { %s27_s23 = ssub.s32 %s814_s18, %s874_s21  ;;  %p37_p0 = scmp.ne.s32.totalorder %s810_s17, %s806_s16 }
   0xa   : > { %p28_p1 = scmp.eq.s32.totalorder %s27_s23, 0  ;;  %p38_p2 = scmp.eq.s32.totalorder %s814_s18, 0 }
   0xb   : > { %p43_p3 = scmp.ne.s32.totalorder %s806_s16, %s802_s15  ;;  %p44_p4 = scmp.eq.s32.totalorder %s870_s19, 0 }
   0xc   : > { %s886_s24 = scalar_select %p28_p1, %s810_s17, %s30_s22  }
   0xd   : > { %p888_p5 = por %p38_p2, %p37_p0  ;;  %p892_p6 = por %p44_p4, %p43_p3 }
   0xe   : > { %p135_p7 = scmp.eq.s32.totalorder %s870_s19, 1  ;;  %p141_p8 = scmp.eq.s32.totalorder %s581_s20, 1 }
   0xf   : > { %s1089_s26 = scalar_select %p892_p6, 1, 0 }
  0x10   : > { %p637_p10 = scmp.lt.s32.totalorder %s814_s18, 2  ;;  %p899_p11 = por %p135_p7, %p37_p0 }
  0x11   : > { %p903_p12 = por %p141_p8, %p43_p3  ;;  %s908_s29 = sand.u32 1, %s810_s17  }
  0x12   : > { %s1090_s27 = scalar_select %p899_p11, 1, 0 }
  0x13   : > { %s1091_s28 = scalar_select %p903_p12, 1, 0 }
  0x14   : > { %s603_s30 = sshll.u32 %s814_s18, 7  ;;  %s584_s5 = sshll.u32 %s908_s29, 3 }
  0x15   : > { %s917_s8 = scalar_lea.hbm %s1081_s0, %s603_s30  ;;  %s171_s9 = scalar_lea.vmem [#allocation2], %s584_s5 }
  0x16   : > { %s179_s10 = sshll.u32 %s171_s9, 4  ;;  %p923_p13 = pnand %p637_p10, %p888_p5  ;;  %s927_s10 = int_to_ptr.vmem [resolvable:$true] %s179_s10 }
  0x17   : > { %s168_s12 = scalar_lea.sflag [#allocation3], %s908_s29  ;;  %s684_s13 = scalar_lea.hbm %s917_s8, 128 }
  0x18   : > { %p685_p2 = scmp.ne.s32.totalorder %s917_s8, %s684_s13  ;;  %p686_p3 = pneg %p923_p13 }
  0x19   : > { %s689_s22 = scalar_lea.hbm %s1081_s0, 256  ;;  %p690_p5 = scmp.lt.u32.totalorder %s917_s8, %s1081_s0 }
  0x1a   : > { %p687_p4 = pnand %p686_p3, %p685_p2  ;;  %p691_p8 = scmp.lt.u32.totalorder %s689_s22, %s684_s13 }
  0x1b   : > { %p693_p9 = scmp.lt.u32.totalorder %s684_s13, %s917_s8 }
  0x1c   : > { %p688_p7 = pneg %p687_p4  ;;  %p692_p10 = por %p691_p8, %p690_p5 }
  0x1e   : > { %p694_p0 = por %p693_p9, %p692_p10 }
  0x20   : > { %p695_p1 = pnand %p694_p0, %p688_p7 }
  0x22   : > { %698 = shalt.err (!%p695_p1)
}
  0x23   : > { %s699_s6 = scalar_lea.vmem %s927_s10, 128  ;;  %s816_s7 = smov [#allocation2]  }
  0x24   : > { %p700_p2 = scmp.ne.s32.totalorder %s927_s10, %s699_s6  ;;  %s704_s9 = sshll.u32 %s816_s7, 4  ;;  %s705_s9 = int_to_ptr.vmem [resolvable:$false] %s704_s9 }
  0x25   : > { %s706_s14 = scalar_lea.vmem %s705_s9, 256  ;;  %p707_p11 = scmp.lt.s32.totalorder %s927_s10, %s705_s9 }
  0x26   : > { %p702_p4 = pnand %p700_p2, %p686_p3  ;;  %p708_p5 = scmp.lt.s32.totalorder %s706_s14, %s699_s6 }
  0x28   : > { %p703_p12 = pneg %p702_p4  ;;  %p709_p8 = por %p708_p5, %p707_p11 }
  0x2a   : > { %p710_p9 = pnand %p709_p8, %p703_p12 }
  0x2c   : > { %713 = shalt.err (!%p710_p9)
}
  0x2d   : > { %629 = dma.hbm_to_vmem [thread:$0]  (!%p923_p13), %s917_s8, 128, %s927_s10, %s168_s12  }
  0x2e   : > { %p1093_p0 = scmp.lt.s32.totalorder %s814_s18, 3  ;;  %p1094_p1 = scmp.ge.s32.totalorder %s814_s18, 1 }
  0x2f   : > { %s970_s23 = scalar_lea.hbm %s1082_s1, %s603_s30  ;;  %s190_s25 = scalar_lea.vmem [#allocation5], %s584_s5 }
  0x30   : > { %p961_p7 = pnand %p1094_p1, %p1093_p0  ;;  %s198_s6 = sshll.u32 %s190_s25, 4  ;;  %s199_s6 = int_to_ptr.vmem [resolvable:$true] %s198_s6 }
  0x31   : > { %s187_s8 = scalar_lea.sflag [#allocation6], %s908_s29  ;;  %s714_s10 = scalar_lea.hbm %s970_s23, 128 }
  0x32   : > { %s1095_s13 = scalar_select %p961_p7, 1, 0 }
  0x33   : > { %p715_p11 = scmp.ne.s32.totalorder %s970_s23, %s714_s10  ;;  %s719_s30 = scalar_lea.hbm %s1082_s1, 256 }
  0x34   : > { %p720_p2 = scmp.lt.u32.totalorder %s970_s23, %s1082_s1  ;;  %p721_p4 = scmp.lt.u32.totalorder %s719_s30, %s714_s10 }
  0x35   : > { %p717_p12 = pnand %p715_p11, %p686_p3  ;;  %p723_p8 = scmp.lt.u32.totalorder %s714_s10, %s970_s23 }
  0x36   : > { %p722_p5 = por %p721_p4, %p720_p2 }
  0x37   : > { %p718_p10 = pneg %p717_p12 }
  0x38   : > { %p724_p9 = por %p723_p8, %p722_p5 }
  0x3a   : > { %p725_p0 = pnand %p724_p9, %p718_p10 }
  0x3c   : > { %728 = shalt.err (!%p725_p0)
}
  0x3d   : > { %s729_s29 = scalar_lea.vmem %s199_s6, 128  ;;  %s817_s5 = smov [#allocation5]  }
  0x3e   : > { %p730_p1 = scmp.ne.s32.totalorder %s199_s6, %s729_s29  ;;  %s734_s20 = sshll.u32 %s817_s5, 4  ;;  %s735_s20 = int_to_ptr.vmem [resolvable:$false] %s734_s20 }
  0x3f   : > { %s736_s22 = scalar_lea.vmem %s735_s20, 256  ;;  %p737_p6 = scmp.lt.s32.totalorder %s199_s6, %s735_s20 }
  0x40   : > { %p732_p11 = pnand %p730_p1, %p686_p3  ;;  %p738_p7 = scmp.lt.s32.totalorder %s736_s22, %s729_s29 }
  0x42   : > { %p733_p12 = pneg %p732_p11  ;;  %p739_p2 = por %p738_p7, %p737_p6 }
  0x44   : > { %p740_p4 = pnand %p739_p2, %p733_p12 }
  0x46   : > { %743 = shalt.err (!%p740_p4)
}
  0x47   : > { %632 = dma.hbm_to_vmem [thread:$0]  (!%p923_p13), %s970_s23, 128, %s199_s6, %s187_s8  }
  0x48   : > { %p1096_p10 = scmp.ne.s32.totalorder %s1095_s13, 0 }
  0x49   : > { %s997_s25 = sand.u32 (!%p1096_p10), 1, %s806_s16   ;;  %p1097_p6 = scmp.ne.s32.totalorder (!%p1096_p10), %s1089_s26, 0 }
  0x4a   : > { %207 = sbr.rel (%p1096_p10) target bundleno = 852 (0x354), region = 36  ;;  %s1000_s10 = sshll.u32 (!%p1096_p10), %s997_s25, 3 }
  0x4b   : > { %s210_s12 = scalar_lea.sflag (!%p1096_p10), [#allocation3], %s997_s25  ;;  %s213_s7 = scalar_lea.vmem (!%p1096_p10), [#allocation2], %s1000_s10 }
  0x51   : > { %789 = dma.done.wait (%p1097_p6), %s210_s12, 128  }
  0x52   : > { %791 = vsyncadd (%p1097_p6), %s210_s12, 4294967168  ;;  %s219_s11 = scalar_lea.sflag [#allocation6], %s997_s25  ;;  %s222_s13 = scalar_lea.vmem [#allocation5], %s1000_s10 }
  0x53   : > { %793 = dma.done.wait (%p1097_p6), %s219_s11, 128  }
  0x54   : > { %795 = vsyncadd (%p1097_p6), %s219_s11, 4294967168  ;;  %v1014_v0 = vld [vmem:[%s213_s7] sm:$0xff]  ;;  %v1016_v1 = vld [vmem:[%s222_s13] sm:$0xff]  ;;  %vm258_vm0 = vcmask 1043456   ;;  %v818_v7 = vmov 0.0   ;;  %vm819_vm1 = vmmov 0   ;;  %v452_v35 = vlaneseq }
  0x55   : > { %v254_v2 = vadd.f32 %v1016_v1, %v1014_v0  ;;  %610 = vmatprep.subr.mxu0 %v818_v7  ;;  %615 = vmatprep.subr.mxu1 %v818_v7  ;;  %v265_v10 = vld [vmem:[%s1083_s2] sm:$0xf]  ;;  %vm266_vm2 = vcmask 31744   ;;  %v820_v15 = vmov 0   ;;  %v821_v33 = vmov 839922192  }
  0x56   : > { %612 = vmatprep.mubr.msk.f32.mxu0 %vm819_vm1, %v818_v7  ;;  %617 = vmatprep.mubr.msk.f32.mxu1 %vm819_vm1, %v818_v7  ;;  %v344_v14 = vld [vmem:[%s1084_s3] sm:$0xff]  ;;  %v450_v34 = vunpack.c.l.s4 %v821_v33  ;;  %v822_v36 = vmov 1985246804   ;;  %v453_v39 = vshrl.u32 %v452_v35, 7  ;;  %s605_s30 = sshll.u32 %s870_s19, 7  ;;  %s251_s9 = scalar_lea.vmem [#allocation7], %s1000_s10 }
  0x57   : > { %v256_v3 = vcombine.high %v254_v2, %v254_v2  ;;  %v259_v4 = vsel %vm258_vm0, %v254_v2, 0.0  ;;  %676 = vset.pattern.permute.xlu0 %v820_v15  ;;  %677 = vset.pattern.permute.xlu1 %v820_v15  ;;  %v463_v37 = vunpack.c.l.s4 %v822_v36  ;;  %s488_s14 = sshll.u32 %s251_s9, 4  ;;  %s1037_s20 = scalar_lea.hbm %s1085_s4, %s605_s30  ;;  %s1039_s14 = int_to_ptr.vmem [resolvable:$true] %s488_s14 }
  0x58   : > { %v451_v38 = vunpack.c.0.s8 %v450_v34  ;;  %s474_s22 = scalar_lea.sflag [#allocation4], %s997_s25  ;;  %s744_s19 = scalar_lea.vmem %s1039_s14, 128 }
  0x59   : > { %v260_v5 = vsel %vm258_vm0, %v256_v3, 0.0  ;;  %v464_v40 = vunpack.c.0.s8 %v463_v37  ;;  %p745_p13 = scmp.ne.s32.totalorder %s1039_s14, %s744_s19  ;;  %p1098_p3 = scmp.ne.s32.totalorder %s1090_s27, 0 }
  0x5a   : > { %v261_v6 = vadd.f32 %v260_v5, %v259_v4  ;;  %v454_v41 = vsub.s32 %v451_v38, %v453_v39  ;;  %s823_s10 = smov [#allocation7]  }
  0x5b   : > { %v467_v42 = vsub.s32 %v464_v40, %v453_v39  ;;  %p746_p7 = pnand %p745_p13, %p1098_p3  ;;  %s748_s12 = sshll.u32 %s823_s10, 4  ;;  %s749_s12 = int_to_ptr.vmem [resolvable:$false] %s748_s12 }
  0x5c   : > { %262 = vadd.xlane.f32.xlu0 %v261_v6  ;;  %s750_s7 = scalar_lea.vmem %s749_s12, 256  ;;  %p751_p8 = scmp.lt.s32.totalorder %s1039_s14, %s749_s12 }
  0x5d   : > { %p747_p5 = pneg %p746_p7  ;;  %p752_p9 = scmp.lt.s32.totalorder %s750_s7, %s744_s19 }
  0x5f   : > { %p753_p0 = por %p752_p9, %p751_p8 }
  0x61   : > { %p754_p1 = pnand %p753_p0, %p747_p5 }
  0xe9   : > { %v263_v8 = vpop.xlane.xlu0 %262 }
  0xea   : > { %v264_v9 = vmul.f32 0.00390625, %v263_v8 }
  0xec   : > { %611 = vmatpush3.msk.msra.mxu0 %vm258_vm0, %v264_v9 }
  0xed   : > { %613 = vmatmul.mubr.msk.f32.vlgmr.msra.gmra.mrb[0].mxu0 %vm266_vm2, %v265_v10 }
 0x1c0   : > { %v339_v11 = vpop.f32.mrb[0].mxu0 }
 0x1c1   : > { %v343_v12 = vmax.f32 %v339_v11, 0.0  ;;  %v614_v13 = vpop.f32.mrb[1].mxu0 }
 0x1c3   : > { %616 = vmatpush3.msk.msra.mxu1 %vm258_vm0, %v343_v12 }
 0x1c4   : > { %618 = vmatmul.mubr.msk.f32.vlgmr.msra.gmra.mrb[0].mxu1 %vm266_vm2, %v344_v14 }
 0x297   : > { %v417_v16 = vpop.f32.mrb[0].mxu1 }
 0x298   : > { %v422_v17 = vrot.slane %v417_v16, 4  ;;  %v619_v18 = vpop.f32.mrb[1].mxu1 }
 0x29a   : > { %v424_v19 = vmax.f32 %v417_v16, %v422_v17 }
 0x29c   : > { %v425_v20 = vsub.f32 %v417_v16, %v424_v19  ;;  %v429_v21 = vrot.slane %v424_v19, 4 }
 0x29e   : > { %v431_v22 = vsub.f32 %v417_v16, %v429_v21  ;;  %v426_v23 = vmul.f32 1.442695, %v425_v20 }
 0x2a0   : > { %v432_v24 = vmul.f32 1.442695, %v431_v22 }
 0x2a2   : > { %678 = vpow2.f32 %v432_v24 }
 0x2a3   : > { %680 = vpow2.f32 %v426_v23 }
 0x2ac   : > { %v679_v25 = vpop.eup %678 }
 0x2ad   : > { %v435_v26 = vrot.slane %v679_v25, 4  ;;  %v681_v27 = vpop.eup %680 }
 0x2af   : > { %v437_v28 = vadd.f32 %v681_v27, %v435_v26 }
 0x2b1   : > { %682 = vrcp.f32 %v437_v28 }
 0x2bb   : > { %v683_v29 = vpop.eup %682 }
 0x2bc   : > { %v440_v30 = vmul.f32 %v683_v29, %v681_v27  ;;  %v442_v31 = vrot.slane %v683_v29, 4 }
 0x2be   : > { %447 = vperm.xlu0 %676, %v440_v30   ;;  %v444_v32 = vmul.f32 %v679_v25, %v442_v31 }
 0x2c0   : > { %460 = vperm.xlu1 %677, %v444_v32  }
 0x33d   : > { %v448_v43 = vpop.permute.xlu0 %447 }
 0x33e   : > { %v455_v44 = vrot.slane %v448_v43, %v454_v41 }
 0x33f   : > { %v461_v45 = vpop.permute.xlu1 %460 }
 0x340   : > { %v468_v46 = vrot.slane %v461_v45, %v467_v42  ;;  %v457_v47 = vmul.f32 %v455_v44, %v1014_v0 }
 0x342   : > { %v470_v48 = vmul.f32 %v468_v46, %v1016_v1 }
 0x344   : > { %v471_v49 = vadd.f32 %v470_v48, %v457_v47 }
 0x346   : > { %472 = vst [vmem:[%s251_s9] sm:$0xff] %v471_v49 }
 0x347   : > { %757 = shalt.err (!%p754_p1)
}
 0x348   : > { %s758_s25 = scalar_lea.hbm %s1037_s20, 128  ;;  %s762_s26 = scalar_lea.hbm %s1085_s4, 256 }
 0x349   : > { %p759_p11 = scmp.ne.s32.totalorder %s1037_s20, %s758_s25  ;;  %p763_p4 = scmp.lt.u32.totalorder %s1037_s20, %s1085_s4 }
 0x34a   : > { %p764_p10 = scmp.lt.u32.totalorder %s762_s26, %s758_s25  ;;  %p766_p13 = scmp.lt.u32.totalorder %s758_s25, %s1037_s20 }
 0x34b   : > { %p760_p12 = pnand %p759_p11, %p1098_p3 }
 0x34c   : > { %p765_p6 = por %p764_p10, %p763_p4 }
 0x34d   : > { %p761_p2 = pneg %p760_p12 }
 0x34e   : > { %p767_p7 = por %p766_p13, %p765_p6 }
 0x350   : > { %p768_p5 = pnand %p767_p7, %p761_p2 }
 0x352   : > { %771 = shalt.err (!%p768_p5)
}
 0x353   : > { %624 = dma.vmem_to_hbm [thread:$0]  (%p1098_p3), %s1039_s14, 128, %s1037_s20, %s474_s22  }
 0x354 PF: > { %s500_s8 = sand.u32 1, %s802_s15   ;;  %p1099_p8 = scmp.ne.s32.totalorder %s1091_s28, 0 }
 0x355   : > { %p1100_p9 = scmp.ge.s32.totalorder %s814_s18, 2  ;;  %s501_s30 = scalar_lea.sflag [#allocation4], %s500_s8 }
 0x357   : > { %p634_p0 = pnand %p1100_p9, %p1099_p8 }
 0x359   : > { %797 = dma.done.wait (!%p634_p0), %s501_s30, 128  }
 0x35a   : > { %799 = vsyncadd (!%p634_p0), %s501_s30, 4294967168  ;;  %p20_p1 = scmp.ge.s32.totalorder %s874_s21, 4   ;;  %s1101_s15 = smov %s806_s16 }
 0x35b   : > { %s1102_s16 = smov %s810_s17  ;;  %s1103_s17 = smov %s886_s24 }
 0x35c   : > { %s1104_s18 = smov %s874_s21  ;;  %22 = sbr.rel (!%p20_p1) target bundleno = 7 (0x7), region = 94 }
 0x363   :  { %506 = vsyncpa [#allocation3], 1 }
 0x364   :  { %508 = vsyncpa [#allocation3 + $0x1], 1 }
 0x365   :  { %509 = vsyncpa [#allocation6], 1 }
 0x366   :  { %511 = vsyncpa [#allocation6 + $0x1], 1 }
 0x367   :  { %512 = vsyncpa [#allocation4], 1 }
 0x368   :  { %514 = vsyncpa [#allocation4 + $0x1], 1 }

</bundles_post_ra>
